<compile_context>
chip_gen: v5e
topology: v5e:2x2
jax: 0.10.0
libtpu: 0.0.40
codegen_flags: <defaults>
</compile_context>

<pallas_src>
import jax
import jax.numpy as jnp
from jax import lax
from jax.experimental import pallas as pl
from jax.experimental.pallas import tpu as pltpu


def _leaky_relu(x, slope=0.2):
    return jnp.where(x > 0, x, slope * x)


def _round_up(x, m):
    return (x + m - 1) // m * m


def _pick_tile_m(M, pacdim, h1, h2, vmem_budget_bytes=20 << 20):
    """Largest batch tile that keeps the VMEM working set under budget."""
    # Per-row bytes: 2x f32 input (double-buffered) + bf16 copy + f32/bf16
    # hidden activations + lane-dense f32 output (double-buffered).
    per_row = 2 * 4 * pacdim + 2 * pacdim + (4 + 2) * h1 + 4 * h2 + 2 * 4
    tm = vmem_budget_bytes // max(per_row, 1)
    tm = min(tm, 8192)
    # v7x has 2 TensorCores: keep >= 2 "parallel" grid steps when M is large.
    if M >= 1024:
        tm = min(tm, _round_up(-(-M // 2), 128))
    if tm >= M:
        return M                       # single full block (always layout-legal)
    if tm >= 128:
        return (tm // 128) * 128       # lane/sublane-friendly tile
    return max(8, (tm // 8) * 8)


def _disc_mlp_kernel(x_ref, w1_ref, b1_ref, w2_ref, b2_ref, w3t_ref, b3_ref,
                     o_ref):
    # x tile: (tm, pacdim) f32 streamed from HBM; bf16 cast in-kernel (VPU).
    x = x_ref[...].astype(jnp.bfloat16)

    # Layer 1: Linear(pacdim -> h1) + LeakyReLU(0.2)   [Dropout = identity]
    h = jnp.dot(x, w1_ref[...], preferred_element_type=jnp.float32)
    h = _leaky_relu(h + b1_ref[...])                   # f32 VPU math

    # Layer 2: Linear(h1 -> h2) + LeakyReLU(0.2)       [Dropout = identity]
    h = jnp.dot(h.astype(jnp.bfloat16), w2_ref[...],
                preferred_element_type=jnp.float32)
    h = _leaky_relu(h + b2_ref[...])

    # Final Linear(h2 -> 1), emitted lane-dense:
    #   (1, h2) . (tm, h2)^T -> (1, tm)   (NT dot_general, f32 accumulation)
    out = lax.dot_general(w3t_ref[...], h,
                          dimension_numbers=(((1,), (1,)), ((), ())),
                          preferred_element_type=jnp.float32)
    o_ref[...] = out + b3_ref[...]                     # (1,1) bias broadcast


def discriminator_forward(x, params, pac):
    """x: (B, input_dim) f32.  params: bf16 hidden weights, f32 w3/biases."""
    B, input_dim = x.shape
    assert B % pac == 0, (
        f"generator batch size ({B}) should be divisible by pac ({pac})")
    pacdim = input_dim * pac
    M = B // pac
    xp = x.reshape(M, pacdim)          # contiguous view: free, stays f32

    h1 = params["w1"].shape[1]
    h2 = params["w2"].shape[1]
    w3t = params["w3"].T               # (1, h2) f32: no per-tile cast

    tm = _pick_tile_m(M, pacdim, h1, h2)
    num_tiles = pl.cdiv(M, tm)

    flops = 2 * M * (pacdim * h1 + h1 * h2 + h2)
    bytes_accessed = int(
        xp.size * xp.dtype.itemsize
        + sum(int(v.size) * v.dtype.itemsize for v in params.values())
        + num_tiles * tm * 4)

    const = lambda i: (0, 0)           # weights/biases resident across grid
    out = pl.pallas_call(
        _disc_mlp_kernel,
        out_shape=jax.ShapeDtypeStruct((num_tiles, tm), jnp.float32),
        grid=(num_tiles,),
        in_specs=[
            pl.BlockSpec((tm, pacdim), lambda i: (i, 0)),   # x tile (f32)
            pl.BlockSpec((pacdim, h1), const),              # w1 (bf16)
            pl.BlockSpec((1, h1), const),                   # b1 (f32)
            pl.BlockSpec((h1, h2), const),                  # w2 (bf16)
            pl.BlockSpec((1, h2), const),                   # b2 (f32)
            pl.BlockSpec((1, h2), const),                   # w3^T (f32)
            pl.BlockSpec((1, 1), const),                    # b3 (f32)
        ],
        out_specs=pl.BlockSpec((1, tm), lambda i: (i, 0)),  # lane-dense row
        compiler_params=pltpu.CompilerParams(
            dimension_semantics=("parallel",),
            vmem_limit_bytes=48 << 20),
        cost_estimate=pl.CostEstimate(
            flops=flops, transcendentals=0, bytes_accessed=bytes_accessed),
    )(xp, params["w1"], params["b1"], params["w2"], params["b2"], w3t,
      params["b3"])

    out = out.reshape(-1)              # (num_tiles*tm,)
    if num_tiles * tm != M:            # ragged last block -> tiny slice copy
        out = out[:M]
    return out.reshape(M, 1)


def init_params(key, input_dim, discriminator_dim, pac):
    """Deterministic init; weights stored (in, out) = transpose of torch Linear."""
    dims = [input_dim * pac] + list(discriminator_dim) + [1]
    n = len(dims) - 1
    keys = jax.random.split(key, 2 * n)
    params = {}
    for i in range(n):
        fan_in, fan_out = dims[i], dims[i + 1]
        bound = 1.0 / (fan_in ** 0.5)
        w = jax.random.uniform(keys[2 * i], (fan_in, fan_out),
                               minval=-bound, maxval=bound, dtype=jnp.float32)
        b = jax.random.uniform(keys[2 * i + 1], (1, fan_out),
                               minval=-bound, maxval=bound, dtype=jnp.float32)
        # Hidden weights bf16 (MXU-native, half DMA); final w3 stays f32.
        params[f"w{i+1}"] = w if i == n - 1 else w.astype(jnp.bfloat16)
        params[f"b{i+1}"] = b
    return params


def reference_forward(x, params, pac):
    """Pure-JAX reference mirroring the kernel's bf16-in / f32-acc numerics."""
    B, input_dim = x.shape
    h = x.reshape(B // pac, input_dim * pac).astype(jnp.bfloat16)
    h = _leaky_relu(jnp.dot(h, params["w1"],
                            preferred_element_type=jnp.float32) + params["b1"])
    h = _leaky_relu(jnp.dot(h.astype(jnp.bfloat16), params["w2"],
                            preferred_element_type=jnp.float32) + params["b2"])
    return jnp.dot(h, params["w3"]) + params["b3"]


if __name__ == "__main__":
    key = jax.random.PRNGKey(0)
    k_in, k_p, k_in2 = jax.random.split(key, 3)

    # Shapes consistent with the module: input_dim=16, pac=2,
    # discriminator_dim=(32, 32)  ->  pacdim=32.
    input_dim = 16
    pac = 2
    discriminator_dim = (32, 32)
    params = init_params(k_p, input_dim, discriminator_dim, pac)

    # Case 1: tiny batch (M=4 -> single full block, no padding anywhere).
    batch = 8
    x = jax.random.normal(k_in, (batch, input_dim), dtype=jnp.float32)
    out = jax.block_until_ready(discriminator_forward(x, params, pac))
    ref = reference_forward(x, params, pac)
    assert out.shape == (batch // pac, 1), out.shape
    assert jnp.allclose(out, ref, atol=1e-2, rtol=1e-2), (out, ref)

    # Case 2: M = 1040 -> multi-step grid with a ragged last block:
    # exercises M-tiling, the double-buffered pipeline, and partial blocks.
    batch2 = 2080
    x2 = jax.random.normal(k_in2, (batch2, input_dim), dtype=jnp.float32)
    out2 = jax.block_until_ready(discriminator_forward(x2, params, pac))
    ref2 = reference_forward(x2, params, pac)
    assert out2.shape == (batch2 // pac, 1), out2.shape
    assert jnp.allclose(out2, ref2, atol=1e-2, rtol=1e-2), float(
        jnp.max(jnp.abs(out2 - ref2)))

    print("KERNEL_OK")
</pallas_src>

<mosaic_0001>
module attributes {stable_mosaic.version = 11 : i64} {
  func.func @_disc_mlp_kernel(%arg0: i32, %arg1: memref<4x32xf32, #tpu.memory_space<vmem>>, %arg2: memref<32x32xbf16, #tpu.memory_space<vmem>>, %arg3: memref<1x32xf32, #tpu.memory_space<vmem>>, %arg4: memref<32x32xbf16, #tpu.memory_space<vmem>>, %arg5: memref<1x32xf32, #tpu.memory_space<vmem>>, %arg6: memref<1x32xf32, #tpu.memory_space<vmem>>, %arg7: memref<1x1xf32, #tpu.memory_space<vmem>>, %arg8: memref<1x4xf32, #tpu.memory_space<vmem>>) attributes {dimension_semantics = [#tpu.dimension_semantics<parallel>], iteration_bounds = array<i64: 1>, scalar_prefetch = 0 : i64, scratch_operands = 0 : i64, tpu.core_type = #tpu.core_type<tc>, window_params = [{transform_indices = @transform_0, window_bounds = array<i64: 4, 32>}, {pipeline_mode = #tpu.pipeline_mode<synchronous>, transform_indices = @transform_1, window_bounds = array<i64: 32, 32>}, {pipeline_mode = #tpu.pipeline_mode<synchronous>, transform_indices = @transform_2, window_bounds = array<i64: 1, 32>}, {pipeline_mode = #tpu.pipeline_mode<synchronous>, transform_indices = @transform_3, window_bounds = array<i64: 32, 32>}, {pipeline_mode = #tpu.pipeline_mode<synchronous>, transform_indices = @transform_4, window_bounds = array<i64: 1, 32>}, {pipeline_mode = #tpu.pipeline_mode<synchronous>, transform_indices = @transform_5, window_bounds = array<i64: 1, 32>}, {pipeline_mode = #tpu.pipeline_mode<synchronous>, transform_indices = @transform_6, window_bounds = array<i64: 1, 1>}, {transform_indices = @transform_7, window_bounds = array<i64: 1, 4>}]} {
    %c0 = arith.constant 0 : index
    %c0_0 = arith.constant 0 : index
    %0 = vector.load %arg1[%c0, %c0_0] : memref<4x32xf32, #tpu.memory_space<vmem>>, vector<4x32xf32>
    %1 = arith.truncf %0 : vector<4x32xf32> to vector<4x32xbf16>
    %c0_1 = arith.constant 0 : index
    %c0_2 = arith.constant 0 : index
    %2 = vector.load %arg2[%c0_1, %c0_2] : memref<32x32xbf16, #tpu.memory_space<vmem>>, vector<32x32xbf16>
    %cst = arith.constant dense<0.000000e+00> : vector<4x32xf32>
    %3 = tpu.matmul %1, %2, %cst {dimension_numbers = #tpu.dot_dimension_numbers<[1], [0], [0], [1], [0, 0, 1, 1], [], []>} : vector<4x32xbf16>, vector<32x32xbf16>, vector<4x32xf32> -> vector<4x32xf32>
    %c0_3 = arith.constant 0 : index
    %c0_4 = arith.constant 0 : index
    %4 = vector.load %arg3[%c0_3, %c0_4] : memref<1x32xf32, #tpu.memory_space<vmem>>, vector<1x32xf32>
    %5 = vector.broadcast %4 : vector<1x32xf32> to vector<4x32xf32>
    %6 = arith.addf %3, %5 : vector<4x32xf32>
    %cst_5 = arith.constant 0.000000e+00 : f32
    %7 = vector.broadcast %cst_5 : f32 to vector<4x32xf32>
    %8 = arith.cmpf ogt, %6, %7 : vector<4x32xf32>
    %cst_6 = arith.constant 2.000000e-01 : f32
    %9 = vector.broadcast %cst_6 : f32 to vector<4x32xf32>
    %10 = arith.mulf %9, %6 : vector<4x32xf32>
    %11 = arith.select %8, %6, %10 : vector<4x32xi1>, vector<4x32xf32>
    %12 = arith.truncf %11 : vector<4x32xf32> to vector<4x32xbf16>
    %c0_7 = arith.constant 0 : index
    %c0_8 = arith.constant 0 : index
    %13 = vector.load %arg4[%c0_7, %c0_8] : memref<32x32xbf16, #tpu.memory_space<vmem>>, vector<32x32xbf16>
    %cst_9 = arith.constant dense<0.000000e+00> : vector<4x32xf32>
    %14 = tpu.matmul %12, %13, %cst_9 {dimension_numbers = #tpu.dot_dimension_numbers<[1], [0], [0], [1], [0, 0, 1, 1], [], []>} : vector<4x32xbf16>, vector<32x32xbf16>, vector<4x32xf32> -> vector<4x32xf32>
    %c0_10 = arith.constant 0 : index
    %c0_11 = arith.constant 0 : index
    %15 = vector.load %arg5[%c0_10, %c0_11] : memref<1x32xf32, #tpu.memory_space<vmem>>, vector<1x32xf32>
    %16 = vector.broadcast %15 : vector<1x32xf32> to vector<4x32xf32>
    %17 = arith.addf %14, %16 : vector<4x32xf32>
    %cst_12 = arith.constant 0.000000e+00 : f32
    %18 = vector.broadcast %cst_12 : f32 to vector<4x32xf32>
    %19 = arith.cmpf ogt, %17, %18 : vector<4x32xf32>
    %cst_13 = arith.constant 2.000000e-01 : f32
    %20 = vector.broadcast %cst_13 : f32 to vector<4x32xf32>
    %21 = arith.mulf %20, %17 : vector<4x32xf32>
    %22 = arith.select %19, %17, %21 : vector<4x32xi1>, vector<4x32xf32>
    %c0_14 = arith.constant 0 : index
    %c0_15 = arith.constant 0 : index
    %23 = vector.load %arg6[%c0_14, %c0_15] : memref<1x32xf32, #tpu.memory_space<vmem>>, vector<1x32xf32>
    %cst_16 = arith.constant dense<0.000000e+00> : vector<1x4xf32>
    %24 = tpu.matmul %23, %22, %cst_16 {dimension_numbers = #tpu.dot_dimension_numbers<[1], [1], [0], [0], [0, 0, 1, 0], [], []>} : vector<1x32xf32>, vector<4x32xf32>, vector<1x4xf32> -> vector<1x4xf32>
    %c0_17 = arith.constant 0 : index
    %c0_18 = arith.constant 0 : index
    %25 = vector.load %arg7[%c0_17, %c0_18] : memref<1x1xf32, #tpu.memory_space<vmem>>, vector<1x1xf32>
    %26 = vector.broadcast %25 : vector<1x1xf32> to vector<1x4xf32>
    %27 = arith.addf %24, %26 : vector<1x4xf32>
    %c0_19 = arith.constant 0 : index
    %c0_20 = arith.constant 0 : index
    %28 = vector.load %arg8[%c0_19, %c0_20] : memref<1x4xf32, #tpu.memory_space<vmem>>, vector<1x4xf32>
    tpu.vector_store %arg8[%c0_19, %c0_20], %27 {strides = array<i32>} : memref<1x4xf32, #tpu.memory_space<vmem>>, vector<1x4xf32>,
    return
  }
  func.func @transform_0(%arg0: i32) -> (i32, i32) {
    %c0_i32 = arith.constant 0 : i32
    %c0_i32_0 = arith.constant 0 : i32
    return %arg0, %c0_i32 : i32, i32
  }
  func.func @transform_1(%arg0: i32) -> (i32, i32) {
    %c0_i32 = arith.constant 0 : i32
    %c0_i32_0 = arith.constant 0 : i32
    %c0_i32_1 = arith.constant 0 : i32
    return %c0_i32, %c0_i32_0 : i32, i32
  }
  func.func @transform_2(%arg0: i32) -> (i32, i32) {
    %c0_i32 = arith.constant 0 : i32
    %c0_i32_0 = arith.constant 0 : i32
    %c0_i32_1 = arith.constant 0 : i32
    return %c0_i32, %c0_i32_0 : i32, i32
  }
  func.func @transform_3(%arg0: i32) -> (i32, i32) {
    %c0_i32 = arith.constant 0 : i32
    %c0_i32_0 = arith.constant 0 : i32
    %c0_i32_1 = arith.constant 0 : i32
    return %c0_i32, %c0_i32_0 : i32, i32
  }
  func.func @transform_4(%arg0: i32) -> (i32, i32) {
    %c0_i32 = arith.constant 0 : i32
    %c0_i32_0 = arith.constant 0 : i32
    %c0_i32_1 = arith.constant 0 : i32
    return %c0_i32, %c0_i32_0 : i32, i32
  }
  func.func @transform_5(%arg0: i32) -> (i32, i32) {
    %c0_i32 = arith.constant 0 : i32
    %c0_i32_0 = arith.constant 0 : i32
    %c0_i32_1 = arith.constant 0 : i32
    return %c0_i32, %c0_i32_0 : i32, i32
  }
  func.func @transform_6(%arg0: i32) -> (i32, i32) {
    %c0_i32 = arith.constant 0 : i32
    %c0_i32_0 = arith.constant 0 : i32
    %c0_i32_1 = arith.constant 0 : i32
    return %c0_i32, %c0_i32_0 : i32, i32
  }
  func.func @transform_7(%arg0: i32) -> (i32, i32) {
    %c0_i32 = arith.constant 0 : i32
    %c0_i32_0 = arith.constant 0 : i32
    return %arg0, %c0_i32 : i32, i32
  }
}

</mosaic_0001>

<bundles_post_ra>
// kernel: tpu_custom_call.1
= control target key start
LH: loop header
LB: loop body
LE: loop exit
PB: predicated region body
PF: predicated region fallthrough
CT: control target
= control target key end

     0   :  { %s422_s0 = inlined_call_operand.hbm [shape: f32[4,32], index: 0, kind: input, shape index: {}]   ;;  %s423_s1 = inlined_call_operand.hbm [shape: bf16[32,32], index: 1, kind: input, shape index: {}]   ;;  %s424_s2 = inlined_call_operand.vmem [shape: f32[1,32], index: 2, kind: input, shape index: {}]   ;;  %s425_s3 = inlined_call_operand.hbm [shape: bf16[32,32], index: 3, kind: input, shape index: {}]   ;;  %s426_s4 = inlined_call_operand.vmem [shape: f32[1,32], index: 4, kind: input, shape index: {}]   ;;  %s427_s5 = inlined_call_operand.vmem [shape: f32[1,32], index: 5, kind: input, shape index: {}]   ;;  %s428_s6 = inlined_call_operand.<no memory space> [shape: f32[1,1], index: 6, kind: input, shape index: {}]   ;;  %s429_s7 = inlined_call_operand.hbm [shape: f32[1,4], index: 7, kind: output, shape index: {}]  }
   0x1   :  { %v12_v0 = vstv %s428_s6 }
   0x2   :  { %13 = vst [vmem:[#allocation2] sm:$0x1] %v12_v0 }
   0x3   :  { %14 = vsyncpa [#allocation4], 0 }
   0x4   :  { %15 = vsyncpa [#allocation7], 0  ;;  %s32_s28 = sshll.u32 %s423_s1, 4  ;;  %s33_s28 = int_to_ptr.hbm [resolvable:$true] %s32_s28 }
   0x5   :  { %16 = vsyncpa [#allocation5], 0  ;;  %s347_s29 = smov [#allocation6]   ;;  %s22_s10 = sshll.u32 %s422_s0, 4  ;;  %s23_s10 = int_to_ptr.hbm [resolvable:$true] %s22_s10 }
   0x6   :  { %s34_s30 = sshll.u32 %s347_s29, 4  ;;  %s348_s11 = smov 64   ;;  %s35_s30 = int_to_ptr.vmem [resolvable:$true] %s34_s30 }
   0x7   :  { %s349_s12 = smov 4   ;;  %s350_s6 = smov [#allocation3]  }
   0x8   :  { %40 = dma.hbm_to_vmem [thread:$0]  %s33_s28, 256, %s35_s30, [#allocation7], %s348_s11, %s348_s11, %s349_s12  }
   0x9   :  { %s24_s13 = sshll.u32 %s350_s6, 4  ;;  %s47_s16 = sshll.u32 %s425_s3, 4  ;;  %s25_s13 = int_to_ptr.vmem [resolvable:$true] %s24_s13  ;;  %s48_s16 = int_to_ptr.hbm [resolvable:$true] %s47_s16 }
   0xa   :  { %27 = dma.hbm_to_vmem [thread:$0]  %s23_s10, 64, %s25_s13, [#allocation4]  }
   0xb   :  { %s351_s1 = smov [#allocation8]  }
   0xc   :  { %s49_s17 = sshll.u32 %s351_s1, 4  ;;  %s50_s17 = int_to_ptr.vmem [resolvable:$true] %s49_s17 }
   0xd   :  { %55 = dma.hbm_to_vmem [thread:$0]  %s48_s16, 256, %s50_s17, [#allocation7], %s348_s11, %s348_s11, %s349_s12  }
   0xe   :  { %341 = dma.done.wait [#allocation4], 64  }
   0xf   :  { %342 = vsyncadd [#allocation4], 4294967232 }
  0x10   :  { %343 = dma.done.wait [#allocation7], 512  }
  0x11   :  { %344 = vsyncadd [#allocation7], 4294966784  ;;  %v232_v1 = vld [vmem:[#allocation6 + $0x8] sm:$0xff]  ;;  %v231_v2 = vld [vmem:[#allocation6] sm:$0xff]  ;;  %vm97_vm0 = vcmask 261120   ;;  %v352_v15 = vmov 0  }
  0x12   :  { %107 = vmatpush.bf16.msra.mxu0 %v232_v1  ;;  %v75_v3 = vld [vmem:[#allocation3] sm:$0xf]  ;;  %v233_v6 = vld [vmem:[#allocation8] sm:$0xff]  ;;  %v243_v7 = vld [vmem:[%s424_s2] ss:$0 sm:$0xff]  ;;  %242 = vset.pattern.permute.xlu0 %v352_v15  ;;  %s353_s21 = smov [#allocation9]  }
  0x13   :  { %v76_v4 = vpack.c.bf16 %v75_v3, %v75_v3  ;;  %v234_v5 = vld [vmem:[#allocation8 + $0x8] sm:$0xff]  ;;  %s198_s22 = sshll.u32 %s353_s21, 4  ;;  %s200_s24 = sshll.u32 %s429_s7, 4  ;;  %vm191_vm3 = vcmask 24576   ;;  %s199_s22 = int_to_ptr.vmem [resolvable:$true] %s198_s22  ;;  %s201_s24 = int_to_ptr.hbm [resolvable:$true] %s200_s24 }
  0x14   :  { %147 = vmatpush.bf16.msra.mxu1 %v234_v5  ;;  %v158_v14 = vld [vmem:[#allocation2] sm:$0x1] }
  0x15   :  { %161 = vperm.xlu0 %242, %v158_v14   ;;  %v244_v16 = vld [vmem:[%s426_s4] ss:$0 sm:$0xff] }
  0x16   :  { %108 = vmatpush.bf16.msra.mxu0 %v231_v2  ;;  %v157_v21 = vld [vmem:[%s427_s5] sm:$0x1] }
  0x18   :  { %148 = vmatpush.bf16.msra.mxu1 %v233_v6 }
  0x19   :  { %219 = vmatmul.msk.bf16.vlgmr.msra.gmra.mxu0 %vm97_vm0, %v76_v4 }
  0x87   :  { %v162_v23 = vpop.permute.xlu0 %161 }
  0x88   :  { %v164_v24 = vperm.slane %v162_v23, 0 }
  0x96   :  { %v110_v8 = vpop.f32.mrf.mxu0 }
  0x97   :  { %v111_v9 = vadd.f32 %v243_v7, %v110_v8 }
  0x99   :  { %vm114_vm1 = vcmp.gt.f32.partialorder %v111_v9, 0.0  ;;  %v115_v10 = vmul.f32 0.2, %v111_v9 }
  0x9b   :  { %v116_v11 = vsel %vm114_vm1, %v111_v9, %v115_v10 }
  0x9c   :  { %v117_v12 = vpack.c.bf16 %v116_v11, %v116_v11 }
  0x9e   :  { %v112_v13 = vpop.f32.mrf.mxu0  ;;  %228 = vmatmul.msk.bf16.vlgmr.msra.gmra.mxu1 %vm97_vm0, %v117_v12 }
 0x11b   :  { %v150_v17 = vpop.f32.mrf.mxu1 }
 0x11c   :  { %v151_v18 = vadd.f32 %v244_v16, %v150_v17 }
 0x11e   :  { %vm154_vm2 = vcmp.gt.f32.partialorder %v151_v18, 0.0  ;;  %v155_v19 = vmul.f32 0.2, %v151_v18 }
 0x120   :  { %v156_v20 = vsel %vm154_vm2, %v151_v18, %v155_v19 }
 0x121   :  { %229 = vmatpush.xpose.msk.msra.mxu2 %vm97_vm0, %v156_v20 }
 0x123   :  { %v152_v22 = vpop.f32.mrf.mxu1 }
 0x124   :  { %230 = vmatmul.msk.f32.vlgmr.msra.gmra.mxu2 %vm97_vm0, %v157_v21 }
 0x1a7   :  { %v188_v25 = vpop.f32.mrf.mxu2 }
 0x1a8   :  { %v189_v26 = vadd.f32 %v188_v25, %v164_v24 }
 0x1aa   :  { %192 = vst.msk [vmem:[#allocation9] sm:$0x1] %vm191_vm3, %v189_v26 }
 0x1ab   :  { %203 = dma.vmem_to_hbm [thread:$0]  %s199_s22, 16, %s201_s24, [#allocation5]  }
 0x1ac   :  { %345 = dma.done.wait [#allocation5], 16  }
 0x1ad   :  { %346 = vsyncadd [#allocation5], 4294967280 }
 0x1ae   :  { %208 = vsyncpa [#allocation4], 1 }
 0x1af   :  { %209 = vsyncpa [#allocation7], 1 }
 0x1b0   :  { %210 = vsyncpa [#allocation5], 1 }

</bundles_post_ra>
